<compile_context>
chip_gen: v7x
topology: tpu7x:2x2x1
jax: 0.10.0
libtpu: 0.0.40
codegen_flags: <defaults>
</compile_context>

<pallas_src>
import functools

import jax
import jax.numpy as jnp
from jax import lax
from jax.experimental import pallas as pl
from jax.experimental.pallas import tpu as pltpu

EPS = 1e-5          # PyTorch BatchNorm2d default eps
NEG_SLOPE = 0.2     # LeakyReLU negative_slope in CBR


def _resblock_kernel(x_ref, b3_ref, d1_ref, spread_ref, fold_ref,
                     g1_ref, be1_ref, g2_ref, be2_ref,
                     o_ref,
                     buf_ref, stat1_ref, stat2_ref,
                     *, inv_cnt):
    """Grid = (phase, image).  phase 0: conv3x3 + BN1 stats; phase 1: BN1 apply +
    LeakyReLU + conv1x1 + BN2 stats; phase 2: BN2 apply + residual + ReLU."""
    p = pl.program_id(0)
    n = pl.program_id(1)
    h, wcp = x_ref.shape

    @pl.when(jnp.logical_and(p == 0, n == 0))
    def _init():
        stat1_ref[...] = jnp.zeros_like(stat1_ref)
        stat2_ref[...] = jnp.zeros_like(stat2_ref)

    def fold_stats(t):
        # one traversal producing [row-sum; row-sumsq], folded per-channel with a
        # single stacked (2, WCp) @ (WCp, C) f32 matmul (padded lanes masked by fold)
        stacked = jnp.concatenate(
            [jnp.sum(t, axis=0, keepdims=True),
             jnp.sum(t * t, axis=0, keepdims=True)], axis=0)
        return jnp.dot(stacked, fold_ref[...], preferred_element_type=jnp.float32)

    def bn_coeffs(stat_ref, g_ref, be_ref):
        mean = stat_ref[0:1, :] * inv_cnt
        var = jnp.maximum(stat_ref[1:2, :] * inv_cnt - mean * mean, 0.0)
        a = g_ref[...] * lax.rsqrt(var + EPS)           # rsqrt -> EUP slot
        sh = be_ref[...] - mean * a
        scale = jnp.dot(a, spread_ref[...], preferred_element_type=jnp.float32)
        shift = jnp.dot(sh, spread_ref[...], preferred_element_type=jnp.float32)
        return scale, shift                              # (1, WCp) each

    @pl.when(p == 0)
    def _phase0():
        xf = x_ref[...]                                  # (H, WCp) f32
        zrow = jnp.zeros((1, wcp), jnp.float32)
        # row-shifted views (H-padding handled here, not in the wrapper)
        x_up = jnp.concatenate([zrow, xf[:h - 1, :]], axis=0).astype(jnp.bfloat16)
        x_dn = jnp.concatenate([xf[1:, :], zrow], axis=0).astype(jnp.bfloat16)
        xb = xf.astype(jnp.bfloat16)
        # 3x3 conv = 3 bf16 MXU matmuls chained into one f32 accumulator
        # (conv bias is omitted: exactly cancelled by train-mode BN mean-subtract)
        acc = jnp.dot(xb, b3_ref[1], preferred_element_type=jnp.float32)
        acc += jnp.dot(x_up, b3_ref[0], preferred_element_type=jnp.float32)
        acc += jnp.dot(x_dn, b3_ref[2], preferred_element_type=jnp.float32)
        buf_ref[n] = acc
        stat1_ref[...] += fold_stats(acc)

    @pl.when(p == 1)
    def _phase1():
        scale1, shift1 = bn_coeffs(stat1_ref, g1_ref, be1_ref)
        y = buf_ref[n] * scale1 + shift1                 # BN1 apply
        y = jnp.where(y >= 0.0, y, NEG_SLOPE * y)        # LeakyReLU(0.2), fused
        z = jnp.dot(y.astype(jnp.bfloat16), d1_ref[...],
                    preferred_element_type=jnp.float32)  # 1x1 conv (block-diag op)
        buf_ref[n] = z                                   # reuse scratch in place
        stat2_ref[...] += fold_stats(z)

    @pl.when(p == 2)
    def _phase2():
        scale2, shift2 = bn_coeffs(stat2_ref, g2_ref, be2_ref)
        # BN2 apply + residual + ReLU, single fused lane-dense store
        o_ref[...] = jnp.maximum(x_ref[...] + buf_ref[n] * scale2 + shift2, 0.0)


def build_operators(params, W, C):
    """Precompute lane-layout conv operators ONCE per weight set (hoisted out of
    the per-call path).  Lane layout: lane = w*C + c, padded up to a multiple of
    128 so all stores are lane-dense."""
    WC = W * C
    WCp = max(128, ((WC + 127) // 128) * 128)
    lane = jnp.arange(WCp)
    wl, cl = lane // C, lane % C
    real = lane < WC
    # banded (WCp, WCp) operators for the 3 ky taps: entry [in_lane, out_lane]
    kx = wl[:, None] - wl[None, :] + 1                   # input col - output col + 1
    valid = (kx >= 0) & (kx <= 2)
    kx_c = jnp.clip(kx, 0, 2)
    w3 = params["w3"]                                    # (3, 3, Cin, Cout) HWIO
    b3 = jnp.stack(
        [jnp.where(valid, w3[ky][kx_c, cl[:, None], cl[None, :]], 0.0)
         for ky in range(3)], axis=0).astype(jnp.bfloat16)          # (3, WCp, WCp)
    d1 = jnp.where(wl[:, None] == wl[None, :],
                   params["w1"][cl[:, None], cl[None, :]], 0.0
                   ).astype(jnp.bfloat16)                            # (WCp, WCp)
    spread = ((cl[None, :] == jnp.arange(C)[:, None]) &
              real[None, :]).astype(jnp.float32)                     # (C, WCp)
    fold = spread.T                                                  # (WCp, C)
    return {"b3": b3, "d1": d1, "spread": spread, "fold": fold, "wcp": WCp}


def res_block_forward_nhwc(x_nhwc, params, ops):
    """Forward of resBlock on an NHWC input (production entry point; avoids the
    NCHW<->NHWC relayout passes)."""
    N, H, W, C = x_nhwc.shape
    WC = W * C
    WCp = ops["wcp"]
    x_f = x_nhwc.reshape(N, H, WC).astype(jnp.float32)   # fused (w, c) lane layout
    if WCp != WC:
        # lane padding only when W*C is not a multiple of 128 (zeros are inert)
        x_f = jnp.pad(x_f, ((0, 0), (0, 0), (0, WCp - WC)))

    kernel = functools.partial(_resblock_kernel, inv_cnt=1.0 / float(N * H * W))

    # generation-aware VMEM budget (0.85x capacity) instead of a hard 64 MiB cap
    est = 4 * (4 * H * WCp + N * H * WCp + 8 * H * WCp + 2 * C * WCp) \
        + 2 * (3 * WCp * WCp + WCp * WCp) + (4 << 20)
    try:
        cap = pltpu.get_tpu_info().vmem_capacity_bytes
    except Exception:
        cap = 64 << 20
    vmem_limit = int(min(0.85 * cap, max(est, 32 << 20)))

    const2 = lambda p_, n_: (0, 0)
    const3 = lambda p_, n_: (0, 0, 0)
    grid_spec = pltpu.PrefetchScalarGridSpec(
        num_scalar_prefetch=0,
        grid=(3, N),                                     # (phase, image), image innermost
        in_specs=[
            # activation block: skip re-fetch during phase 1 (x unused there)
            pl.BlockSpec((None, H, WCp),
                         lambda p_, n_: (jnp.where(p_ == 1, 0, n_), 0, 0)),
            # operators / affine params: constant index_map -> VMEM-resident
            pl.BlockSpec((3, WCp, WCp), const3),
            pl.BlockSpec((WCp, WCp), const2),
            pl.BlockSpec((C, WCp), const2),
            pl.BlockSpec((WCp, C), const2),
            pl.BlockSpec((1, C), const2),
            pl.BlockSpec((1, C), const2),
            pl.BlockSpec((1, C), const2),
            pl.BlockSpec((1, C), const2),
        ],
        # output block only advances in phase 2 -> no garbage write-backs
        out_specs=pl.BlockSpec((None, H, WCp),
                               lambda p_, n_: (jnp.where(p_ == 2, n_, 0), 0, 0)),
        scratch_shapes=[
            pltpu.VMEM((N, H, WCp), jnp.float32),        # acc in phase 0/1, z in 1/2
            pltpu.VMEM((2, C), jnp.float32),             # BN1 [sum; sumsq]
            pltpu.VMEM((2, C), jnp.float32),             # BN2 [sum; sumsq]
        ],
    )
    out_f = pl.pallas_call(
        kernel,
        out_shape=jax.ShapeDtypeStruct((N, H, WCp), jnp.float32),
        grid_spec=grid_spec,
        compiler_params=pltpu.CompilerParams(
            # image axis accumulates into shared scratch -> must stay "arbitrary"
            dimension_semantics=("arbitrary", "arbitrary"),
            vmem_limit_bytes=vmem_limit),
        # default double-buffering on the activation spec; pl.Buffered(3) is a
        # sweep knob once blocks get large enough for DMA to be exposed.
    )(x_f, ops["b3"], ops["d1"], ops["spread"], ops["fold"],
      params["g1"], params["be1"], params["g2"], params["be2"])
    return out_f[:, :, :WC].reshape(N, H, W, C)


def res_block_forward(x_nchw, params, ops):
    """PyTorch-compatible NCHW interface (the transposes are boundary plumbing;
    feed NHWC via res_block_forward_nhwc to avoid them)."""
    x = jnp.transpose(x_nchw, (0, 2, 3, 1))
    y = res_block_forward_nhwc(x, params, ops)
    return jnp.transpose(y, (0, 3, 1, 2))


def init_params(C, key):
    ks = jax.random.split(key, 4)
    return {
        "w3": jax.random.normal(ks[0], (3, 3, C, C), jnp.float32) * 0.1,  # HWIO
        "b3": jax.random.normal(ks[1], (1, C), jnp.float32) * 0.1,
        "w1": jax.random.normal(ks[2], (C, C), jnp.float32) * 0.1,        # (Cin, Cout)
        "b1": jax.random.normal(ks[3], (1, C), jnp.float32) * 0.1,
        # BatchNorm affine params: PyTorch default init (weight=1, bias=0)
        "g1": jnp.ones((1, C), jnp.float32), "be1": jnp.zeros((1, C), jnp.float32),
        "g2": jnp.ones((1, C), jnp.float32), "be2": jnp.zeros((1, C), jnp.float32),
    }


def ref_forward(x_nchw, p):
    """Pure-JAX f32 reference (keeps the conv biases; train-mode BN cancels them)."""
    x = jnp.transpose(x_nchw, (0, 2, 3, 1)).astype(jnp.float32)
    y = lax.conv_general_dilated(x, p["w3"], (1, 1), "SAME",
                                 dimension_numbers=("NHWC", "HWIO", "NHWC"))
    y = y + p["b3"].reshape(1, 1, 1, -1)

    def bn(t, g, b):
        m = jnp.mean(t, axis=(0, 1, 2), keepdims=True)
        v = jnp.mean((t - m) ** 2, axis=(0, 1, 2), keepdims=True)
        return (t - m) * g.reshape(1, 1, 1, -1) * lax.rsqrt(v + EPS) \
            + b.reshape(1, 1, 1, -1)

    y = bn(y, p["g1"], p["be1"])
    y = jnp.where(y >= 0, y, NEG_SLOPE * y)
    z = jnp.einsum("nhwc,cd->nhwd", y, p["w1"]) + p["b1"].reshape(1, 1, 1, -1)
    z = bn(z, p["g2"], p["be2"])
    out = jnp.maximum(x + z, 0.0)
    return jnp.transpose(out, (0, 3, 1, 2))


if __name__ == "__main__":
    key = jax.random.PRNGKey(0)
    # (2,4,16,16): W*C=64 -> lane-padded to 128; (2,8,16,32): W*C=256, sized for
    # the 256-wide MXU on v6e/v7x.
    for (N, C, H, W) in [(2, 4, 16, 16), (2, 8, 16, 32)]:
        kx_, kp_ = jax.random.split(jax.random.fold_in(key, C * 1000 + W))
        x = jax.random.normal(kx_, (N, C, H, W), jnp.float32)   # PyTorch NCHW input
        params = init_params(C, kp_)
        ops = build_operators(params, W, C)      # hoisted, reused across forward calls

        out = jax.block_until_ready(res_block_forward(x, params, ops))
        ref = jax.block_until_ready(ref_forward(x, params))

        assert out.shape == (N, C, H, W)
        err = float(jnp.max(jnp.abs(out - ref)))
        # bf16 MXU operands vs f32 reference -> relaxed tolerance
        assert err < 5e-2, f"max abs err {err}"
    print("KERNEL_OK")
</pallas_src>

<mosaic_0001>
module attributes {stable_mosaic.version = 11 : i64} {
  func.func @_resblock_kernel(%arg0: i32, %arg1: i32, %arg2: memref<1x16x128xf32, #tpu.memory_space<vmem>>, %arg3: memref<3x128x128xbf16, #tpu.memory_space<vmem>>, %arg4: memref<128x128xbf16, #tpu.memory_space<vmem>>, %arg5: memref<4x128xf32, #tpu.memory_space<vmem>>, %arg6: memref<128x4xf32, #tpu.memory_space<vmem>>, %arg7: memref<1x4xf32, #tpu.memory_space<vmem>>, %arg8: memref<1x4xf32, #tpu.memory_space<vmem>>, %arg9: memref<1x4xf32, #tpu.memory_space<vmem>>, %arg10: memref<1x4xf32, #tpu.memory_space<vmem>>, %arg11: memref<1x16x128xf32, #tpu.memory_space<vmem>>, %arg12: memref<2x16x128xf32, #tpu.memory_space<vmem>>, %arg13: memref<2x4xf32, #tpu.memory_space<vmem>>, %arg14: memref<2x4xf32, #tpu.memory_space<vmem>>) attributes {dimension_semantics = [#tpu.dimension_semantics<arbitrary>, #tpu.dimension_semantics<arbitrary>], iteration_bounds = array<i64: 3, 2>, scalar_prefetch = 0 : i64, scratch_operands = 3 : i64, tpu.core_type = #tpu.core_type<tc>, window_params = [{transform_indices = @transform_0, window_bounds = array<i64: 1, 16, 128>}, {pipeline_mode = #tpu.pipeline_mode<synchronous>, transform_indices = @transform_1, window_bounds = array<i64: 3, 128, 128>}, {pipeline_mode = #tpu.pipeline_mode<synchronous>, transform_indices = @transform_2, window_bounds = array<i64: 128, 128>}, {pipeline_mode = #tpu.pipeline_mode<synchronous>, transform_indices = @transform_3, window_bounds = array<i64: 4, 128>}, {pipeline_mode = #tpu.pipeline_mode<synchronous>, transform_indices = @transform_4, window_bounds = array<i64: 128, 4>}, {pipeline_mode = #tpu.pipeline_mode<synchronous>, transform_indices = @transform_5, window_bounds = array<i64: 1, 4>}, {pipeline_mode = #tpu.pipeline_mode<synchronous>, transform_indices = @transform_6, window_bounds = array<i64: 1, 4>}, {pipeline_mode = #tpu.pipeline_mode<synchronous>, transform_indices = @transform_7, window_bounds = array<i64: 1, 4>}, {pipeline_mode = #tpu.pipeline_mode<synchronous>, transform_indices = @transform_8, window_bounds = array<i64: 1, 4>}, {transform_indices = @transform_9, window_bounds = array<i64: 1, 16, 128>}]} {
    %c0_i32 = arith.constant 0 : i32
    %0 = arith.cmpi eq, %arg0, %c0_i32 : i32
    %c0_i32_0 = arith.constant 0 : i32
    %1 = arith.cmpi eq, %arg1, %c0_i32_0 : i32
    %2 = arith.andi %0, %1 : i1
    %3 = arith.extui %2 : i1 to i32
    %c0_i32_1 = arith.constant 0 : i32
    %4 = arith.cmpi ne, %3, %c0_i32_1 : i32
    scf.if %4 {
      %cst = arith.constant 0.000000e+00 : f32
      %14 = vector.broadcast %cst : f32 to vector<2x4xf32>
      %c0 = arith.constant 0 : index
      %c0_6 = arith.constant 0 : index
      %15 = vector.load %arg13[%c0, %c0_6] : memref<2x4xf32, #tpu.memory_space<vmem>>, vector<2x4xf32>
      tpu.vector_store %arg13[%c0, %c0_6], %14 {strides = array<i32>} : memref<2x4xf32, #tpu.memory_space<vmem>>, vector<2x4xf32>,
      %cst_7 = arith.constant 0.000000e+00 : f32
      %16 = vector.broadcast %cst_7 : f32 to vector<2x4xf32>
      %c0_8 = arith.constant 0 : index
      %c0_9 = arith.constant 0 : index
      %17 = vector.load %arg14[%c0_8, %c0_9] : memref<2x4xf32, #tpu.memory_space<vmem>>, vector<2x4xf32>
      tpu.vector_store %arg14[%c0_8, %c0_9], %16 {strides = array<i32>} : memref<2x4xf32, #tpu.memory_space<vmem>>, vector<2x4xf32>,
    } else {
    }
    %c0_i32_2 = arith.constant 0 : i32
    %5 = arith.cmpi eq, %arg0, %c0_i32_2 : i32
    %6 = arith.extui %5 : i1 to i32
    %c0_i32_3 = arith.constant 0 : i32
    %7 = arith.cmpi ne, %6, %c0_i32_3 : i32
    scf.if %7 {
      %c0 = arith.constant 0 : index
      %c0_6 = arith.constant 0 : index
      %c0_7 = arith.constant 0 : index
      %14 = vector.load %arg2[%c0, %c0_6, %c0_7] : memref<1x16x128xf32, #tpu.memory_space<vmem>>, vector<1x16x128xf32>
      %15 = vector.shape_cast %14 : vector<1x16x128xf32> to vector<16x128xf32>
      %cst = arith.constant 0.000000e+00 : f32
      %16 = vector.broadcast %cst : f32 to vector<1x128xf32>
      %17 = vector.extract_strided_slice %15 {offsets = [0, 0], sizes = [15, 128], strides = [1, 1]} : vector<16x128xf32> to vector<15x128xf32>
      %18 = tpu.concatenate %16, %17 in 0 : vector<1x128xf32>, vector<15x128xf32> -> vector<16x128xf32>
      %19 = arith.truncf %18 : vector<16x128xf32> to vector<16x128xbf16>
      %20 = vector.extract_strided_slice %15 {offsets = [1, 0], sizes = [15, 128], strides = [1, 1]} : vector<16x128xf32> to vector<15x128xf32>
      %21 = tpu.concatenate %20, %16 in 0 : vector<15x128xf32>, vector<1x128xf32> -> vector<16x128xf32>
      %22 = arith.truncf %21 : vector<16x128xf32> to vector<16x128xbf16>
      %23 = arith.truncf %15 : vector<16x128xf32> to vector<16x128xbf16>
      %c1 = arith.constant 1 : index
      %c0_8 = arith.constant 0 : index
      %c0_9 = arith.constant 0 : index
      %24 = vector.load %arg3[%c1, %c0_8, %c0_9] : memref<3x128x128xbf16, #tpu.memory_space<vmem>>, vector<1x128x128xbf16>
      %25 = vector.shape_cast %24 : vector<1x128x128xbf16> to vector<128x128xbf16>
      %cst_10 = arith.constant dense<0.000000e+00> : vector<16x128xf32>
      %26 = tpu.matmul %23, %25, %cst_10 {dimension_numbers = #tpu.dot_dimension_numbers<[1], [0], [0], [1], [0, 0, 1, 1], [], []>} : vector<16x128xbf16>, vector<128x128xbf16>, vector<16x128xf32> -> vector<16x128xf32>
      %c0_11 = arith.constant 0 : index
      %c0_12 = arith.constant 0 : index
      %c0_13 = arith.constant 0 : index
      %27 = vector.load %arg3[%c0_11, %c0_12, %c0_13] : memref<3x128x128xbf16, #tpu.memory_space<vmem>>, vector<1x128x128xbf16>
      %28 = vector.shape_cast %27 : vector<1x128x128xbf16> to vector<128x128xbf16>
      %cst_14 = arith.constant dense<0.000000e+00> : vector<16x128xf32>
      %29 = tpu.matmul %19, %28, %cst_14 {dimension_numbers = #tpu.dot_dimension_numbers<[1], [0], [0], [1], [0, 0, 1, 1], [], []>} : vector<16x128xbf16>, vector<128x128xbf16>, vector<16x128xf32> -> vector<16x128xf32>
      %30 = arith.addf %26, %29 : vector<16x128xf32>
      %c2 = arith.constant 2 : index
      %c0_15 = arith.constant 0 : index
      %c0_16 = arith.constant 0 : index
      %31 = vector.load %arg3[%c2, %c0_15, %c0_16] : memref<3x128x128xbf16, #tpu.memory_space<vmem>>, vector<1x128x128xbf16>
      %32 = vector.shape_cast %31 : vector<1x128x128xbf16> to vector<128x128xbf16>
      %cst_17 = arith.constant dense<0.000000e+00> : vector<16x128xf32>
      %33 = tpu.matmul %22, %32, %cst_17 {dimension_numbers = #tpu.dot_dimension_numbers<[1], [0], [0], [1], [0, 0, 1, 1], [], []>} : vector<16x128xbf16>, vector<128x128xbf16>, vector<16x128xf32> -> vector<16x128xf32>
      %34 = arith.addf %30, %33 : vector<16x128xf32>
      %35 = arith.index_cast %arg1 : i32 to index
      %c0_18 = arith.constant 0 : index
      %c0_19 = arith.constant 0 : index
      %36 = vector.load %arg12[%35, %c0_18, %c0_19] : memref<2x16x128xf32, #tpu.memory_space<vmem>>, vector<1x16x128xf32>
      %37 = vector.shape_cast %36 : vector<1x16x128xf32> to vector<16x128xf32>
      %38 = vector.shape_cast %34 : vector<16x128xf32> to vector<1x16x128xf32>
      tpu.vector_store %arg12[%35, %c0_18, %c0_19], %38 {strides = array<i32>} : memref<2x16x128xf32, #tpu.memory_space<vmem>>, vector<1x16x128xf32>,
      %c0_20 = arith.constant 0 : index
      %c0_21 = arith.constant 0 : index
      %39 = vector.load %arg13[%c0_20, %c0_21] : memref<2x4xf32, #tpu.memory_space<vmem>>, vector<2x4xf32>
      %cst_22 = arith.constant dense<0.000000e+00> : vector<128xf32>
      %40 = vector.multi_reduction <add>, %34, %cst_22 [0] : vector<16x128xf32> to vector<128xf32>
      %41 = vector.shape_cast %40 : vector<128xf32> to vector<1x128xf32>
      %42 = arith.mulf %34, %34 : vector<16x128xf32>
      %cst_23 = arith.constant dense<0.000000e+00> : vector<128xf32>
      %43 = vector.multi_reduction <add>, %42, %cst_23 [0] : vector<16x128xf32> to vector<128xf32>
      %44 = vector.shape_cast %43 : vector<128xf32> to vector<1x128xf32>
      %45 = tpu.concatenate %41, %44 in 0 : vector<1x128xf32>, vector<1x128xf32> -> vector<2x128xf32>
      %c0_24 = arith.constant 0 : index
      %c0_25 = arith.constant 0 : index
      %46 = vector.load %arg6[%c0_24, %c0_25] : memref<128x4xf32, #tpu.memory_space<vmem>>, vector<128x4xf32>
      %cst_26 = arith.constant dense<0.000000e+00> : vector<2x4xf32>
      %47 = tpu.matmul %45, %46, %cst_26 {dimension_numbers = #tpu.dot_dimension_numbers<[1], [0], [0], [1], [0, 0, 1, 1], [], []>} : vector<2x128xf32>, vector<128x4xf32>, vector<2x4xf32> -> vector<2x4xf32>
      %48 = arith.addf %39, %47 : vector<2x4xf32>
      %c0_27 = arith.constant 0 : index
      %c0_28 = arith.constant 0 : index
      %49 = vector.load %arg13[%c0_27, %c0_28] : memref<2x4xf32, #tpu.memory_space<vmem>>, vector<2x4xf32>
      tpu.vector_store %arg13[%c0_27, %c0_28], %48 {strides = array<i32>} : memref<2x4xf32, #tpu.memory_space<vmem>>, vector<2x4xf32>,
    } else {
    }
    %c1_i32 = arith.constant 1 : i32
    %8 = arith.cmpi eq, %arg0, %c1_i32 : i32
    %9 = arith.extui %8 : i1 to i32
    %c0_i32_4 = arith.constant 0 : i32
    %10 = arith.cmpi ne, %9, %c0_i32_4 : i32
    scf.if %10 {
      %c0 = arith.constant 0 : index
      %c0_6 = arith.constant 0 : index
      %14 = vector.load %arg13[%c0, %c0_6] : memref<2x4xf32, #tpu.memory_space<vmem>>, vector<1x4xf32>
      %cst = arith.constant 0.001953125 : f32
      %15 = vector.broadcast %cst : f32 to vector<1x4xf32>
      %16 = arith.mulf %14, %15 : vector<1x4xf32>
      %c1 = arith.constant 1 : index
      %c0_7 = arith.constant 0 : index
      %17 = vector.load %arg13[%c1, %c0_7] : memref<2x4xf32, #tpu.memory_space<vmem>>, vector<1x4xf32>
      %cst_8 = arith.constant 0.001953125 : f32
      %18 = vector.broadcast %cst_8 : f32 to vector<1x4xf32>
      %19 = arith.mulf %17, %18 : vector<1x4xf32>
      %20 = arith.mulf %16, %16 : vector<1x4xf32>
      %21 = arith.subf %19, %20 : vector<1x4xf32>
      %cst_9 = arith.constant 0.000000e+00 : f32
      %22 = vector.broadcast %cst_9 : f32 to vector<1x4xf32>
      %23 = arith.maximumf %21, %22 : vector<1x4xf32>
      %c0_10 = arith.constant 0 : index
      %c0_11 = arith.constant 0 : index
      %24 = vector.load %arg7[%c0_10, %c0_11] : memref<1x4xf32, #tpu.memory_space<vmem>>, vector<1x4xf32>
      %cst_12 = arith.constant 9.99999974E-6 : f32
      %25 = vector.broadcast %cst_12 : f32 to vector<1x4xf32>
      %26 = arith.addf %23, %25 : vector<1x4xf32>
      %27 = math.rsqrt %26 : vector<1x4xf32>
      %28 = arith.mulf %24, %27 : vector<1x4xf32>
      %c0_13 = arith.constant 0 : index
      %c0_14 = arith.constant 0 : index
      %29 = vector.load %arg8[%c0_13, %c0_14] : memref<1x4xf32, #tpu.memory_space<vmem>>, vector<1x4xf32>
      %30 = arith.mulf %16, %28 : vector<1x4xf32>
      %31 = arith.subf %29, %30 : vector<1x4xf32>
      %c0_15 = arith.constant 0 : index
      %c0_16 = arith.constant 0 : index
      %32 = vector.load %arg5[%c0_15, %c0_16] : memref<4x128xf32, #tpu.memory_space<vmem>>, vector<4x128xf32>
      %cst_17 = arith.constant dense<0.000000e+00> : vector<1x128xf32>
      %33 = tpu.matmul %28, %32, %cst_17 {dimension_numbers = #tpu.dot_dimension_numbers<[1], [0], [0], [1], [0, 0, 1, 1], [], []>} : vector<1x4xf32>, vector<4x128xf32>, vector<1x128xf32> -> vector<1x128xf32>
      %c0_18 = arith.constant 0 : index
      %c0_19 = arith.constant 0 : index
      %34 = vector.load %arg5[%c0_18, %c0_19] : memref<4x128xf32, #tpu.memory_space<vmem>>, vector<4x128xf32>
      %cst_20 = arith.constant dense<0.000000e+00> : vector<1x128xf32>
      %35 = tpu.matmul %31, %34, %cst_20 {dimension_numbers = #tpu.dot_dimension_numbers<[1], [0], [0], [1], [0, 0, 1, 1], [], []>} : vector<1x4xf32>, vector<4x128xf32>, vector<1x128xf32> -> vector<1x128xf32>
      %36 = arith.index_cast %arg1 : i32 to index
      %c0_21 = arith.constant 0 : index
      %c0_22 = arith.constant 0 : index
      %37 = vector.load %arg12[%36, %c0_21, %c0_22] : memref<2x16x128xf32, #tpu.memory_space<vmem>>, vector<1x16x128xf32>
      %38 = vector.shape_cast %37 : vector<1x16x128xf32> to vector<16x128xf32>
      %39 = vector.broadcast %33 : vector<1x128xf32> to vector<16x128xf32>
      %40 = arith.mulf %38, %39 : vector<16x128xf32>
      %41 = vector.broadcast %35 : vector<1x128xf32> to vector<16x128xf32>
      %42 = arith.addf %40, %41 : vector<16x128xf32>
      %cst_23 = arith.constant 0.000000e+00 : f32
      %43 = vector.broadcast %cst_23 : f32 to vector<16x128xf32>
      %44 = arith.cmpf oge, %42, %43 : vector<16x128xf32>
      %cst_24 = arith.constant 2.000000e-01 : f32
      %45 = vector.broadcast %cst_24 : f32 to vector<16x128xf32>
      %46 = arith.mulf %45, %42 : vector<16x128xf32>
      %47 = arith.select %44, %42, %46 : vector<16x128xi1>, vector<16x128xf32>
      %48 = arith.truncf %47 : vector<16x128xf32> to vector<16x128xbf16>
      %c0_25 = arith.constant 0 : index
      %c0_26 = arith.constant 0 : index
      %49 = vector.load %arg4[%c0_25, %c0_26] : memref<128x128xbf16, #tpu.memory_space<vmem>>, vector<128x128xbf16>
      %cst_27 = arith.constant dense<0.000000e+00> : vector<16x128xf32>
      %50 = tpu.matmul %48, %49, %cst_27 {dimension_numbers = #tpu.dot_dimension_numbers<[1], [0], [0], [1], [0, 0, 1, 1], [], []>} : vector<16x128xbf16>, vector<128x128xbf16>, vector<16x128xf32> -> vector<16x128xf32>
      %51 = arith.index_cast %arg1 : i32 to index
      %c0_28 = arith.constant 0 : index
      %c0_29 = arith.constant 0 : index
      %52 = vector.load %arg12[%51, %c0_28, %c0_29] : memref<2x16x128xf32, #tpu.memory_space<vmem>>, vector<1x16x128xf32>
      %53 = vector.shape_cast %52 : vector<1x16x128xf32> to vector<16x128xf32>
      %54 = vector.shape_cast %50 : vector<16x128xf32> to vector<1x16x128xf32>
      tpu.vector_store %arg12[%51, %c0_28, %c0_29], %54 {strides = array<i32>} : memref<2x16x128xf32, #tpu.memory_space<vmem>>, vector<1x16x128xf32>,
      %c0_30 = arith.constant 0 : index
      %c0_31 = arith.constant 0 : index
      %55 = vector.load %arg14[%c0_30, %c0_31] : memref<2x4xf32, #tpu.memory_space<vmem>>, vector<2x4xf32>
      %cst_32 = arith.constant dense<0.000000e+00> : vector<128xf32>
      %56 = vector.multi_reduction <add>, %50, %cst_32 [0] : vector<16x128xf32> to vector<128xf32>
      %57 = vector.shape_cast %56 : vector<128xf32> to vector<1x128xf32>
      %58 = arith.mulf %50, %50 : vector<16x128xf32>
      %cst_33 = arith.constant dense<0.000000e+00> : vector<128xf32>
      %59 = vector.multi_reduction <add>, %58, %cst_33 [0] : vector<16x128xf32> to vector<128xf32>
      %60 = vector.shape_cast %59 : vector<128xf32> to vector<1x128xf32>
      %61 = tpu.concatenate %57, %60 in 0 : vector<1x128xf32>, vector<1x128xf32> -> vector<2x128xf32>
      %c0_34 = arith.constant 0 : index
      %c0_35 = arith.constant 0 : index
      %62 = vector.load %arg6[%c0_34, %c0_35] : memref<128x4xf32, #tpu.memory_space<vmem>>, vector<128x4xf32>
      %cst_36 = arith.constant dense<0.000000e+00> : vector<2x4xf32>
      %63 = tpu.matmul %61, %62, %cst_36 {dimension_numbers = #tpu.dot_dimension_numbers<[1], [0], [0], [1], [0, 0, 1, 1], [], []>} : vector<2x128xf32>, vector<128x4xf32>, vector<2x4xf32> -> vector<2x4xf32>
      %64 = arith.addf %55, %63 : vector<2x4xf32>
      %c0_37 = arith.constant 0 : index
      %c0_38 = arith.constant 0 : index
      %65 = vector.load %arg14[%c0_37, %c0_38] : memref<2x4xf32, #tpu.memory_space<vmem>>, vector<2x4xf32>
      tpu.vector_store %arg14[%c0_37, %c0_38], %64 {strides = array<i32>} : memref<2x4xf32, #tpu.memory_space<vmem>>, vector<2x4xf32>,
    } else {
    }
    %c2_i32 = arith.constant 2 : i32
    %11 = arith.cmpi eq, %arg0, %c2_i32 : i32
    %12 = arith.extui %11 : i1 to i32
    %c0_i32_5 = arith.constant 0 : i32
    %13 = arith.cmpi ne, %12, %c0_i32_5 : i32
    scf.if %13 {
      %c0 = arith.constant 0 : index
      %c0_6 = arith.constant 0 : index
      %14 = vector.load %arg14[%c0, %c0_6] : memref<2x4xf32, #tpu.memory_space<vmem>>, vector<1x4xf32>
      %cst = arith.constant 0.001953125 : f32
      %15 = vector.broadcast %cst : f32 to vector<1x4xf32>
      %16 = arith.mulf %14, %15 : vector<1x4xf32>
      %c1 = arith.constant 1 : index
      %c0_7 = arith.constant 0 : index
      %17 = vector.load %arg14[%c1, %c0_7] : memref<2x4xf32, #tpu.memory_space<vmem>>, vector<1x4xf32>
      %cst_8 = arith.constant 0.001953125 : f32
      %18 = vector.broadcast %cst_8 : f32 to vector<1x4xf32>
      %19 = arith.mulf %17, %18 : vector<1x4xf32>
      %20 = arith.mulf %16, %16 : vector<1x4xf32>
      %21 = arith.subf %19, %20 : vector<1x4xf32>
      %cst_9 = arith.constant 0.000000e+00 : f32
      %22 = vector.broadcast %cst_9 : f32 to vector<1x4xf32>
      %23 = arith.maximumf %21, %22 : vector<1x4xf32>
      %c0_10 = arith.constant 0 : index
      %c0_11 = arith.constant 0 : index
      %24 = vector.load %arg9[%c0_10, %c0_11] : memref<1x4xf32, #tpu.memory_space<vmem>>, vector<1x4xf32>
      %cst_12 = arith.constant 9.99999974E-6 : f32
      %25 = vector.broadcast %cst_12 : f32 to vector<1x4xf32>
      %26 = arith.addf %23, %25 : vector<1x4xf32>
      %27 = math.rsqrt %26 : vector<1x4xf32>
      %28 = arith.mulf %24, %27 : vector<1x4xf32>
      %c0_13 = arith.constant 0 : index
      %c0_14 = arith.constant 0 : index
      %29 = vector.load %arg10[%c0_13, %c0_14] : memref<1x4xf32, #tpu.memory_space<vmem>>, vector<1x4xf32>
      %30 = arith.mulf %16, %28 : vector<1x4xf32>
      %31 = arith.subf %29, %30 : vector<1x4xf32>
      %c0_15 = arith.constant 0 : index
      %c0_16 = arith.constant 0 : index
      %32 = vector.load %arg5[%c0_15, %c0_16] : memref<4x128xf32, #tpu.memory_space<vmem>>, vector<4x128xf32>
      %cst_17 = arith.constant dense<0.000000e+00> : vector<1x128xf32>
      %33 = tpu.matmul %28, %32, %cst_17 {dimension_numbers = #tpu.dot_dimension_numbers<[1], [0], [0], [1], [0, 0, 1, 1], [], []>} : vector<1x4xf32>, vector<4x128xf32>, vector<1x128xf32> -> vector<1x128xf32>
      %c0_18 = arith.constant 0 : index
      %c0_19 = arith.constant 0 : index
      %34 = vector.load %arg5[%c0_18, %c0_19] : memref<4x128xf32, #tpu.memory_space<vmem>>, vector<4x128xf32>
      %cst_20 = arith.constant dense<0.000000e+00> : vector<1x128xf32>
      %35 = tpu.matmul %31, %34, %cst_20 {dimension_numbers = #tpu.dot_dimension_numbers<[1], [0], [0], [1], [0, 0, 1, 1], [], []>} : vector<1x4xf32>, vector<4x128xf32>, vector<1x128xf32> -> vector<1x128xf32>
      %c0_21 = arith.constant 0 : index
      %c0_22 = arith.constant 0 : index
      %c0_23 = arith.constant 0 : index
      %36 = vector.load %arg2[%c0_21, %c0_22, %c0_23] : memref<1x16x128xf32, #tpu.memory_space<vmem>>, vector<1x16x128xf32>
      %37 = vector.shape_cast %36 : vector<1x16x128xf32> to vector<16x128xf32>
      %38 = arith.index_cast %arg1 : i32 to index
      %c0_24 = arith.constant 0 : index
      %c0_25 = arith.constant 0 : index
      %39 = vector.load %arg12[%38, %c0_24, %c0_25] : memref<2x16x128xf32, #tpu.memory_space<vmem>>, vector<1x16x128xf32>
      %40 = vector.shape_cast %39 : vector<1x16x128xf32> to vector<16x128xf32>
      %41 = vector.broadcast %33 : vector<1x128xf32> to vector<16x128xf32>
      %42 = arith.mulf %40, %41 : vector<16x128xf32>
      %43 = arith.addf %37, %42 : vector<16x128xf32>
      %44 = vector.broadcast %35 : vector<1x128xf32> to vector<16x128xf32>
      %45 = arith.addf %43, %44 : vector<16x128xf32>
      %cst_26 = arith.constant 0.000000e+00 : f32
      %46 = vector.broadcast %cst_26 : f32 to vector<16x128xf32>
      %47 = arith.maximumf %45, %46 : vector<16x128xf32>
      %c0_27 = arith.constant 0 : index
      %c0_28 = arith.constant 0 : index
      %c0_29 = arith.constant 0 : index
      %48 = vector.load %arg11[%c0_27, %c0_28, %c0_29] : memref<1x16x128xf32, #tpu.memory_space<vmem>>, vector<1x16x128xf32>
      %49 = vector.shape_cast %48 : vector<1x16x128xf32> to vector<16x128xf32>
      %50 = vector.shape_cast %47 : vector<16x128xf32> to vector<1x16x128xf32>
      tpu.vector_store %arg11[%c0_27, %c0_28, %c0_29], %50 {strides = array<i32>} : memref<1x16x128xf32, #tpu.memory_space<vmem>>, vector<1x16x128xf32>,
    } else {
    }
    return
  }
  func.func @transform_0(%arg0: i32, %arg1: i32) -> (i32, i32, i32) {
    %c1_i32 = arith.constant 1 : i32
    %0 = arith.cmpi eq, %arg0, %c1_i32 : i32
    %c0_i32 = arith.constant 0 : i32
    %1 = arith.select %0, %c0_i32, %arg1 : i32
    %c0_i32_0 = arith.constant 0 : i32
    %c0_i32_1 = arith.constant 0 : i32
    %c0_i32_2 = arith.constant 0 : i32
    return %1, %c0_i32_0, %c0_i32_1 : i32, i32, i32
  }
  func.func @transform_1(%arg0: i32, %arg1: i32) -> (i32, i32, i32) {
    %c0_i32 = arith.constant 0 : i32
    %c0_i32_0 = arith.constant 0 : i32
    %c0_i32_1 = arith.constant 0 : i32
    %c0_i32_2 = arith.constant 0 : i32
    return %c0_i32, %c0_i32_0, %c0_i32_1 : i32, i32, i32
  }
  func.func @transform_2(%arg0: i32, %arg1: i32) -> (i32, i32) {
    %c0_i32 = arith.constant 0 : i32
    %c0_i32_0 = arith.constant 0 : i32
    %c0_i32_1 = arith.constant 0 : i32
    return %c0_i32, %c0_i32_0 : i32, i32
  }
  func.func @transform_3(%arg0: i32, %arg1: i32) -> (i32, i32) {
    %c0_i32 = arith.constant 0 : i32
    %c0_i32_0 = arith.constant 0 : i32
    %c0_i32_1 = arith.constant 0 : i32
    return %c0_i32, %c0_i32_0 : i32, i32
  }
  func.func @transform_4(%arg0: i32, %arg1: i32) -> (i32, i32) {
    %c0_i32 = arith.constant 0 : i32
    %c0_i32_0 = arith.constant 0 : i32
    %c0_i32_1 = arith.constant 0 : i32
    return %c0_i32, %c0_i32_0 : i32, i32
  }
  func.func @transform_5(%arg0: i32, %arg1: i32) -> (i32, i32) {
    %c0_i32 = arith.constant 0 : i32
    %c0_i32_0 = arith.constant 0 : i32
    %c0_i32_1 = arith.constant 0 : i32
    return %c0_i32, %c0_i32_0 : i32, i32
  }
  func.func @transform_6(%arg0: i32, %arg1: i32) -> (i32, i32) {
    %c0_i32 = arith.constant 0 : i32
    %c0_i32_0 = arith.constant 0 : i32
    %c0_i32_1 = arith.constant 0 : i32
    return %c0_i32, %c0_i32_0 : i32, i32
  }
  func.func @transform_7(%arg0: i32, %arg1: i32) -> (i32, i32) {
    %c0_i32 = arith.constant 0 : i32
    %c0_i32_0 = arith.constant 0 : i32
    %c0_i32_1 = arith.constant 0 : i32
    return %c0_i32, %c0_i32_0 : i32, i32
  }
  func.func @transform_8(%arg0: i32, %arg1: i32) -> (i32, i32) {
    %c0_i32 = arith.constant 0 : i32
    %c0_i32_0 = arith.constant 0 : i32
    %c0_i32_1 = arith.constant 0 : i32
    return %c0_i32, %c0_i32_0 : i32, i32
  }
  func.func @transform_9(%arg0: i32, %arg1: i32) -> (i32, i32, i32) {
    %c2_i32 = arith.constant 2 : i32
    %0 = arith.cmpi eq, %arg0, %c2_i32 : i32
    %c0_i32 = arith.constant 0 : i32
    %1 = arith.select %0, %arg1, %c0_i32 : i32
    %c0_i32_0 = arith.constant 0 : i32
    %c0_i32_1 = arith.constant 0 : i32
    %c0_i32_2 = arith.constant 0 : i32
    return %1, %c0_i32_0, %c0_i32_1 : i32, i32, i32
  }
}

</mosaic_0001>

<bundles_post_ra>
// kernel: tpu_custom_call.1
= control target key start
LH: loop header
LB: loop body
LE: loop exit
PB: predicated region body
PF: predicated region fallthrough
CT: control target
= control target key end

     0   :  { %14 = vsyncpa [#allocation6], 0  ;;  %s2643_s0 = inlined_call_operand.vmem [shape: f32[2,16,128], index: 0, kind: input, shape index: {}]   ;;  %s2644_s1 = inlined_call_operand.hbm [shape: bf16[3,128,128], index: 1, kind: input, shape index: {}]   ;;  %s2645_s2 = inlined_call_operand.vmem [shape: bf16[128,128], index: 2, kind: input, shape index: {}]   ;;  %s2646_s3 = inlined_call_operand.vmem [shape: f32[4,128], index: 3, kind: input, shape index: {}]   ;;  %s2647_s4 = inlined_call_operand.vmem [shape: f32[128,4], index: 4, kind: input, shape index: {}]   ;;  %s2648_s5 = inlined_call_operand.vmem [shape: f32[1,4], index: 5, kind: input, shape index: {}]   ;;  %s2649_s6 = inlined_call_operand.vmem [shape: f32[1,4], index: 6, kind: input, shape index: {}]   ;;  %s2650_s7 = inlined_call_operand.vmem [shape: f32[1,4], index: 7, kind: input, shape index: {}]   ;;  %s2651_s8 = inlined_call_operand.vmem [shape: f32[1,4], index: 8, kind: input, shape index: {}]   ;;  %s2652_s9 = inlined_call_operand.hbm [shape: f32[2,16,128], index: 9, kind: output, shape index: {}]  }
   0x1   :  { %15 = vsyncpa [#allocation7], 0 }
   0x2   :  { %17 = vsyncpa [#allocation7 + $0x1], 0  ;;  %s2249_s30 = smov 0   ;;  %s2251_s10 = smov 0  }
   0x3   :  { %s2253_s11 = smov 0   ;;  %s2255_s12 = smov 0  }
   0x4   :  { %s2257_s13 = smov 0   ;;  %s2259_s14 = smov 0  }
   0x5   :  { %s2261_s15 = smov 0   ;;  %s2263_s16 = smov 0  }
   0x6 LB: > { %2662 = sst [smem:[#allocation11_spill]] %s2173_s14  ;;  %s1551_s17 = sadd.s32 4294967295, %s2181_s16   ;;  %s2181_s16 = sphi %s2263_s16, %s23_s16   ;;  %s2177_s15 = sphi %s2261_s15, %s2680_s15   ;;  %s2173_s14 = sphi %s2259_s14, %s2679_s14   ;;  %s2169_s13 = sphi %s2257_s13, %s2678_s13   ;;  %s2165_s12 = sphi %s2255_s12, %s2677_s12   ;;  %s2161_s11 = sphi %s2253_s11, %s2683_s11   ;;  %s2157_s10 = sphi %s2251_s10, %s2682_s10   ;;  %s2153_s30 = sphi %s2249_s30, %s2681_s30  }
   0x7   : > { %2663 = sst [smem:[#allocation12_spill]] %s2177_s15  ;;  %s1552_s18 = sadd.s32 4294967294, %s2181_s16  }
   0x8   : > { %s32_s19 = sadd.s32 1, %s2173_s14  ;;  %s35_s20 = sadd.s32 1, %s2177_s15 }
   0x9   : > { %p33_p0 = scmp.ge.s32.totalorder %s32_s19, 2  ;;  %p237_p1 = scmp.eq.s32.totalorder %s2177_s15, 2 }
   0xa   : > { %s244_s21 = sadd.s32 1, %s2161_s11  ;;  %p254_p2 = scmp.ne.s32.totalorder %s2161_s11, %s2157_s10 }
   0xb   : > { %s2685_s19 = smov (%p33_p0, %s32_s19), 0  ;;  %s2687_s20 = smov (!%p33_p0, %s35_s20), %s2177_s15 }
   0xc   : > { %2664 = sst [smem:[#allocation13_spill]] %s2685_s19  ;;  %p37_p3 = scmp.ge.s32.totalorder %s2687_s20, 3 }
   0xd   : > { %s238_s22 = scalar_select %p237_p1, %s2173_s14, 0 }
   0xe   : > { %p255_p4 = scmp.eq.s32.totalorder %s1551_s17, 5  ;;  %p260_p5 = scmp.ne.s32.totalorder %s2157_s10, %s2153_s30 }
   0xf   : > { %p261_p6 = scmp.eq.s32.totalorder %s1552_s18, 5  ;;  %s2689_s20 = smov (%p37_p3, %s2687_s20), 0 }
  0x10   : > { %2665 = sst [smem:[#allocation14_spill]] %s2689_s20  ;;  %p2305_p7 = por %p255_p4, %p254_p2 }
  0x11   : > { %p2309_p8 = por %p261_p6, %p260_p5  ;;  %p239_p9 = scmp.eq.s32.totalorder %s2689_s20, 2 }
  0x12   : > { %s2666_s23 = scalar_select %p2305_p7, 1, 0 }
  0x13   : > { %s2667_s24 = scalar_select %p2309_p8, 1, 0 }
  0x14   : > { %p1553_p10 = scmp.ge.s32.totalorder %s2181_s16, 1  ;;  %p268_p11 = scmp.lt.s32.totalorder %s2181_s16, 7 }
  0x15   : > { %2668 = sst [smem:[#allocation15_spill]] %s2667_s24  ;;  %p2321_p13 = scmp.eq.s32.totalorder %s1551_s17, 0 }
  0x16   : > { %s240_s25 = scalar_select %p239_p9, %s2685_s19, 0 }
  0x17   : > { %p2317_p12 = pnand %p1553_p10, %p268_p11  ;;  %s2183_s29 = smov [#allocation5]  }
  0x18   : > { %s2670_s27 = scalar_select %p2321_p13, 1, 0 }
  0x19   : > { %s2669_s26 = scalar_select %p2317_p12, 1, 0 }
  0x1a   : > { %s241_s28 = ssub.s32 %s238_s22, %s240_s25  ;;  %p1929_p1 = pneg %p2317_p12 }
  0x1b   : > { %p242_p0 = scmp.eq.s32.totalorder %s241_s28, 0  ;;  %s280_s18 = sshll.u32 %s2183_s29, 4  ;;  %s281_s18 = int_to_ptr.vmem [resolvable:$true] %s280_s18 }
  0x1c   : > { %p2332_p2 = pnand %p2321_p13, %p1929_p1  ;;  %s2055_s14 = scalar_lea.hbm %s2644_s1, 3072 }
  0x1d   : > { %s2328_s20 = scalar_select %p242_p0, %s2161_s11, %s244_s21  }
  0x1e   : > { %p2056_p3 = scmp.ne.s32.totalorder %s2644_s1, %s2055_s14  ;;  %p2057_p4 = pneg %p2332_p2 }
  0x1f   : > { %p2062_p9 = scmp.lt.u32.totalorder %s2055_s14, %s2644_s1 }
  0x20   : > { %p2058_p5 = pnand %p2057_p4, %p2056_p3 }
  0x22   : > { %p2059_p6 = pneg %p2058_p5 }
  0x24   : > { %p2064_p10 = pnand %p2062_p9, %p2059_p6 }
  0x26   : > { %2067 = shalt.err (!%p2064_p10)
}
  0x27   : > { %s2068_s28 = scalar_lea.vmem %s281_s18, 3072  ;;  %p2076_p8 = scmp.lt.s32.totalorder %s281_s18, %s281_s18 }
  0x28   : > { %p2069_p11 = scmp.ne.s32.totalorder %s281_s18, %s2068_s28  ;;  %p2077_p7 = scmp.lt.s32.totalorder %s2068_s28, %s2068_s28 }
  0x2a   : > { %p2071_p0 = pnand %p2069_p11, %p2057_p4  ;;  %p2078_p13 = por %p2077_p7, %p2076_p8 }
  0x2c   : > { %p2072_p1 = pneg %p2071_p0 }
  0x2e   : > { %p2079_p12 = pnand %p2078_p13, %p2072_p1 }
  0x30   : > { %2082 = shalt.err (!%p2079_p12)
}
  0x31   : > { %s2184_s15 = smov 64   ;;  %s2185_s24 = smov 4  }
  0x32   : > { %1932 = dma.hbm_to_vmem [thread:$0]  (!%p2332_p2), %s2644_s1, 3072, %s281_s18, [#allocation6], %s2184_s15, %s2184_s15, %s2185_s24  }
  0x33   : > { %p2672_p3 = scmp.ne.s32.totalorder %s2669_s26, 0 }
  0x34   : > { %p2673_p5 = scmp.ne.s32.totalorder (!%p2672_p3), %s2670_s27, 0 }
  0x35   : > { %329 = sbr.rel (%p2672_p3) target bundleno = 1569 (0x621), region = 56 }
  0x3c   : > { %2144 = dma.done.wait (%p2673_p5), [#allocation6], 3072  }
  0x3d   : > { %2146 = vsyncadd (%p2673_p5), [#allocation6], 4294964224  ;;  %s364_s14 = sand.u32 1, %s2157_s10   ;;  %p367_p7 = scmp.eq.s32.totalorder %s2169_s13, 1 }
  0x3e   : > { %s1558_s19 = sshll.u32 %s364_s14, 4  ;;  %p379_p8 = scmp.eq.s32.totalorder %s2169_s13, 0 }
  0x3f   : > { %p380_p12 = scmp.eq.s32.totalorder %s2165_s12, 0  ;;  %s2370_s25 = scalar_lea.vmem [#allocation8], %s1558_s19 }
  0x40   : > { %s368_s26 = scalar_select %p367_p7, 0, %s2165_s12 }
  0x41   : > { %p381_p13 = pnand %p380_p12, %p379_p8 }
  0x42   : > { %p369_p2 = scmp.lt.s32.totalorder %s368_s26, 1  ;;  %vm385_vm0 = vcmask (!%p381_p13), 25600   ;;  %v2186_v0 = vmov (!%p381_p13), 0.0  }
  0x43   : > { %384 = sbr.rel (%p381_p13) target bundleno = 74 (0x4a), region = 64  ;;  %386 = vst.msk [vmem:[#allocation3] sm:$0x3] (!%p381_p13), %vm385_vm0, %v2186_v0  ;;  %387 = vst.msk [vmem:[#allocation4] sm:$0x3] (!%p381_p13), %vm385_vm0, %v2186_v0 }
  0x44   : > { %s2691_s26 = smov (!%p369_p2, %s368_s26), 1 }
  0x45   : > { %s1619_s18 = sshll.u32 %s2691_s26, 4 }
  0x46   : > { %s2368_s21 = scalar_lea.vmem %s2643_s0, %s1619_s18 }
  0x4a PF: > { %p1561_p4 = scmp.ne.s32.totalorder %s2169_s13, 0 }
  0x4b   : > { %v2019_v1 = vld [vmem:[#allocation5 + $0x40] sm:$0xff] (!%p1561_p4)   ;;  %v2187_v2 = vmov (!%p1561_p4), 0.0   ;;  %v2020_v3 = vld [vmem:[#allocation5 + $0x48] sm:$0xff] (!%p1561_p4)   ;;  %vm2188_vm1 = vmmov (!%p1561_p4), 0   ;;  %v2021_v4 = vld [vmem:[#allocation5 + $0x50] sm:$0xff] (!%p1561_p4)   ;;  %vm395_vm2 = vcmask (!%p1561_p4), 1040384  }
  0x4c   : > { %390 = sbr.rel (%p1561_p4) target bundleno = 588 (0x24c), region = 68  ;;  %1719 = vmatprep.subr.bf16.mxu0 (!%p1561_p4), %v2187_v2  ;;  %1699 = vmatprep.subr.bf16.mxu1 (!%p1561_p4), %v2187_v2  ;;  %v2027_v5 = vld [vmem:[#allocation5] sm:$0xff] (!%p1561_p4)   ;;  %v2022_v6 = vld [vmem:[#allocation5 + $0x58] sm:$0xff] (!%p1561_p4)   ;;  %v2029_v7 = vld [vmem:[#allocation5 + $0x8] sm:$0xff] (!%p1561_p4)   ;;  %vm2189_vm4 = vmmov (!%p1561_p4), 1   ;;  %v2190_v31 = vmov (!%p1561_p4), 0.0|0.0  }
  0x4d   : > { %1720 = vmatpush3.bf16.msra.mxu0 (!%p1561_p4), %v2019_v1  ;;  %1735 = vmatprep.mubr.msk.bf16.mxu0 (!%p1561_p4), %vm2188_vm1, %v2187_v2  ;;  %v2023_v8 = vld [vmem:[#allocation5 + $0x60] sm:$0xff] (!%p1561_p4)   ;;  %v2031_v9 = vld [vmem:[#allocation5 + $0x10] sm:$0xff] (!%p1561_p4)   ;;  %v2024_v10 = vld [vmem:[#allocation5 + $0x68] sm:$0xff] (!%p1561_p4)   ;;  %vm403_vm6 = vcmask (!%p1561_p4), 1046528   ;;  %s1593_s24 = sshll.u32 (!%p1561_p4), %s2165_s12, 4  ;;  %vm840_vm8 = vcmask (!%p1561_p4), 25600  }
  0x4e   : > { %1721 = vmatprep.subr.bf16.mxu0 (!%p1561_p4), %v2187_v2  ;;  %1715 = vmatprep.mubr.msk.bf16.mxu1 (!%p1561_p4), %vm2188_vm1, %v2187_v2  ;;  %v2033_v11 = vld [vmem:[#allocation5 + $0x18] sm:$0xff] (!%p1561_p4)   ;;  %v2025_v12 = vld [vmem:[#allocation5 + $0x70] sm:$0xff] (!%p1561_p4)   ;;  %v2035_v13 = vld [vmem:[#allocation5 + $0x20] sm:$0xff] (!%p1561_p4)   ;;  %s732_s29 = scalar_lea.vmem (!%p1561_p4), [#allocation2], %s1593_s24 }
  0x4f   : > { %1700 = vmatpush3.bf16.msra.mxu1 (!%p1561_p4), %v2027_v5  ;;  %v2026_v14 = vld [vmem:[#allocation5 + $0x78] sm:$0xff] (!%p1561_p4)   ;;  %v2393_v16 = vld [vmem:[%s2368_s21 + $0x8] sm:$0xff] (!%p1561_p4)  ;;  %v2039_v22 = vld [vmem:[#allocation5 + $0x30] sm:$0xff] (!%p1561_p4)  }
  0x50   : > { %1701 = vmatprep.subr.bf16.mxu1 (!%p1561_p4), %v2187_v2  ;;  %v2390_v15 = vld [vmem:[%s2368_s21] sm:$0xff] (!%p1561_p4)  ;;  %v2037_v17 = vld [vmem:[#allocation5 + $0x28] sm:$0xff] (!%p1561_p4)   ;;  %v397_v20 = vrot.slane (!%p1561_p4), %v2393_v16, 7  ;;  %vm1570_vm3 = vmneg (!%p1561_p4), %vm395_vm2  ;;  %v405_v39 = vrot.slane (!%p1561_p4), %v2393_v16, 1 }
  0x51   : > { %1722 = vmatpush3.bf16.msra.mxu0 (!%p1561_p4), %v2020_v3  ;;  %v411_v18 = vpack.c.bf16 (!%p1561_p4), %v2393_v16, %v2390_v15  ;;  %v396_v19 = vrot.slane (!%p1561_p4), %v2390_v15, 7  ;;  %v2028_v21 = vld [vmem:[#allocation5 + $0x80] sm:$0xff] (!%p1561_p4)   ;;  %v2030_v23 = vld [vmem:[#allocation5 + $0x88] sm:$0xff] (!%p1561_p4)   ;;  %v2041_v24 = vld [vmem:[#allocation5 + $0x38] sm:$0xff] (!%p1561_p4)   ;;  %v404_v38 = vrot.slane (!%p1561_p4), %v2390_v15, 1 }
  0x52   : > { %1723 = vmatprep.subr.bf16.mxu0 (!%p1561_p4), %v2187_v2  ;;  %v753_v26 = vld [vmem:[%s2647_s4] sm:$0xff] (!%p1561_p4)  ;;  %v754_v27 = vld [vmem:[%s2647_s4 + $0x8] sm:$0xff] (!%p1561_p4)  ;;  %v2032_v29 = vld [vmem:[#allocation5 + $0x90] sm:$0xff] (!%p1561_p4)  }
  0x53   : > { %1702 = vmatpush3.bf16.msra.mxu1 %v2029_v7  ;;  %v398_v25 = vsel %vm395_vm2, %v396_v19, %v397_v20  ;;  %vm1571_vm5 = vmpackc.low %vm2189_vm4, %vm1570_vm3  ;;  %v1870_v30 = vpack.c.bf16 %v754_v27, %v753_v26  ;;  %v755_v32 = vld [vmem:[%s2647_s4 + $0x10] sm:$0xff]  ;;  %v756_v33 = vld [vmem:[%s2647_s4 + $0x18] sm:$0xff]  ;;  %v406_v41 = vsel %vm403_vm6, %v404_v38, %v405_v39 }
  0x54   : > { %1703 = vmatprep.subr.bf16.mxu1 %v2187_v2  ;;  %v1572_v28 = vpack.c.bf16 %v398_v25, %v396_v19  ;;  %v2034_v34 = vld [vmem:[#allocation5 + $0x98] sm:$0xff]   ;;  %v1873_v35 = vpack.c.bf16 %v756_v33, %v755_v32  ;;  %v2036_v36 = vld [vmem:[#allocation5 + $0xa0] sm:$0xff]   ;;  %v2038_v37 = vld [vmem:[#allocation5 + $0xa8] sm:$0xff]   ;;  %v1591_v43 = vpack.c.bf16 %v405_v39, %v406_v41 }
  0x55   : > { %1724 = vmatpush3.bf16.msra.mxu0 %v2021_v4  ;;  %v2040_v40 = vld [vmem:[#allocation5 + $0xb0] sm:$0xff]   ;;  %v2042_v42 = vld [vmem:[#allocation5 + $0xb8] sm:$0xff]   ;;  %vm1590_vm7 = vmpackc.low %vm403_vm6, %vm2189_vm4 }
  0x56   : > { %1725 = vmatprep.subr.bf16.mxu0 %v2187_v2  ;;  %v757_v44 = vld [vmem:[%s2647_s4 + $0x20] sm:$0xff]  ;;  %v758_v45 = vld [vmem:[%s2647_s4 + $0x28] sm:$0xff]  ;;  %v759_v47 = vld [vmem:[%s2647_s4 + $0x30] sm:$0xff] }
  0x57   : > { %1704 = vmatpush3.bf16.msra.mxu1 %v2031_v9  ;;  %v1876_v46 = vpack.c.bf16 %v758_v45, %v757_v44  ;;  %v760_v48 = vld [vmem:[%s2647_s4 + $0x38] sm:$0xff]  ;;  %v761_v50 = vld [vmem:[%s2647_s4 + $0x40] sm:$0xff]  ;;  %v762_v51 = vld [vmem:[%s2647_s4 + $0x48] sm:$0xff] }
  0x58   : > { %1705 = vmatprep.subr.bf16.mxu1 %v2187_v2  ;;  %v1879_v49 = vpack.c.bf16 %v760_v48, %v759_v47  ;;  %v1882_v52 = vpack.c.bf16 %v762_v51, %v761_v50  ;;  %v763_v53 = vld [vmem:[%s2647_s4 + $0x50] sm:$0xff]  ;;  %v764_v54 = vld [vmem:[%s2647_s4 + $0x58] sm:$0xff]  ;;  %v765_v56 = vld [vmem:[%s2647_s4 + $0x60] sm:$0xff] }
  0x59   : > { %1726 = vmatpush3.bf16.msra.mxu0 %v2022_v6  ;;  %v1885_v55 = vpack.c.bf16 %v764_v54, %v763_v53  ;;  %v766_v57 = vld [vmem:[%s2647_s4 + $0x68] sm:$0xff]  ;;  %v767_v59 = vld [vmem:[%s2647_s4 + $0x70] sm:$0xff]  ;;  %v768_v60 = vld [vmem:[%s2647_s4 + $0x78] sm:$0xff] }
  0x5a   : > { %1727 = vmatprep.subr.bf16.mxu0 %v2187_v2  ;;  %v1888_v58 = vpack.c.bf16 %v766_v57, %v765_v56  ;;  %v1891_v61 = vpack.c.bf16 %v768_v60, %v767_v59  ;;  %v735_v25 = vld [vmem:[#allocation3] sm:$0x3] }
  0x5b   : > { %1706 = vmatpush3.bf16.msra.mxu1 %v2033_v11 }
  0x5c   : > { %1707 = vmatprep.subr.bf16.mxu1 %v2187_v2 }
  0x5d   : > { %1728 = vmatpush3.bf16.msra.mxu0 %v2023_v8 }
  0x5e   : > { %1729 = vmatprep.subr.bf16.mxu0 %v2187_v2 }
  0x5f   : > { %1708 = vmatpush3.bf16.msra.mxu1 %v2035_v13 }
  0x60   : > { %1709 = vmatprep.subr.bf16.mxu1 %v2187_v2 }
  0x61   : > { %1730 = vmatpush3.bf16.msra.mxu0 %v2024_v10 }
  0x62   : > { %1731 = vmatprep.subr.bf16.mxu0 %v2187_v2 }
  0x63   : > { %1710 = vmatpush3.bf16.msra.mxu1 %v2037_v17 }
  0x64   : > { %1711 = vmatprep.subr.bf16.mxu1 %v2187_v2 }
  0x65   : > { %1732 = vmatpush3.bf16.msra.mxu0 %v2025_v12 }
  0x66   : > { %1733 = vmatprep.subr.bf16.mxu0 %v2187_v2 }
  0x67   : > { %1712 = vmatpush3.bf16.msra.mxu1 %v2039_v22 }
  0x68   : > { %1713 = vmatprep.subr.bf16.mxu1 %v2187_v2 }
  0x69   : > { %1734 = vmatpush3.bf16.msra.mxu0 %v2026_v14 }
  0x6a   : > { %1739 = vmatprep.subr.bf16.mxu0 %v2187_v2 }
  0x6b   : > { %1714 = vmatpush3.bf16.msra.mxu1 %v2041_v24 }
  0x6c   : > { %1736 = vmatmul.mubr.bf16.vlgmr.msra.gmra.mrb[0].mxu0 %v411_v18  ;;  %1869 = vmatprep.subr.bf16.mxu1 %v2190_v31 }
  0x6d   : > { %1740 = vmatpush3.bf16.msra.mxu0 %v2028_v21  ;;  %1755 = vmatprep.mubr.msk.bf16.mxu0 %vm2188_vm1, %v2187_v2 }
  0x6e   : > { %1741 = vmatprep.subr.bf16.mxu0 %v2187_v2  ;;  %1716 = vmatmul.mubr.msk.bf16.vlgmr.msra.gmra.mrb[0].mxu1 %vm1571_vm5, %v1572_v28 }
  0x6f   : > { %1871 = vmatpush3.bf16.msra.mxu1 %v1870_v30  ;;  %1791 = vmatprep.mubr.msk.f32.mxu1 %vm2188_vm1, %v2187_v2 }
  0x70   : > { %1872 = vmatprep.subr.bf16.mxu1 %v2190_v31 }
  0x71   : > { %1742 = vmatpush3.bf16.msra.mxu0 %v2030_v23 }
  0x72   : > { %1743 = vmatprep.subr.bf16.mxu0 %v2187_v2 }
  0x73   : > { %1874 = vmatpush3.bf16.msra.mxu1 %v1873_v35 }
  0x74   : > { %1875 = vmatprep.subr.bf16.mxu1 %v2190_v31 }
  0x75   : > { %1744 = vmatpush3.bf16.msra.mxu0 %v2032_v29 }
  0x76   : > { %1745 = vmatprep.subr.bf16.mxu0 %v2187_v2 }
  0x77   : > { %1877 = vmatpush3.bf16.msra.mxu1 %v1876_v46 }
  0x78   : > { %1878 = vmatprep.subr.bf16.mxu1 %v2190_v31 }
  0x79   : > { %1746 = vmatpush3.bf16.msra.mxu0 %v2034_v34 }
  0x7a   : > { %1747 = vmatprep.subr.bf16.mxu0 %v2187_v2 }
  0x7b   : > { %1880 = vmatpush3.bf16.msra.mxu1 %v1879_v49 }
  0x7c   : > { %1881 = vmatprep.subr.bf16.mxu1 %v2190_v31 }
  0x7d   : > { %1748 = vmatpush3.bf16.msra.mxu0 %v2036_v36 }
  0x7e   : > { %1749 = vmatprep.subr.bf16.mxu0 %v2187_v2 }
  0x7f   : > { %1883 = vmatpush3.bf16.msra.mxu1 %v1882_v52 }
  0x80   : > { %1884 = vmatprep.subr.bf16.mxu1 %v2190_v31 }
  0x81   : > { %1750 = vmatpush3.bf16.msra.mxu0 %v2038_v37 }
  0x82   : > { %1751 = vmatprep.subr.bf16.mxu0 %v2187_v2 }
  0x83   : > { %1886 = vmatpush3.bf16.msra.mxu1 %v1885_v55 }
  0x84   : > { %1887 = vmatprep.subr.bf16.mxu1 %v2190_v31 }
  0x85   : > { %1752 = vmatpush3.bf16.msra.mxu0 %v2040_v40 }
  0x86   : > { %1753 = vmatprep.subr.bf16.mxu0 %v2187_v2 }
  0x87   : > { %1889 = vmatpush3.bf16.msra.mxu1 %v1888_v58 }
  0x88   : > { %1890 = vmatprep.subr.bf16.mxu1 %v2190_v31 }
  0x89   : > { %1754 = vmatpush3.bf16.msra.mxu0 %v2042_v42 }
  0x8b   : > { %1892 = vmatpush3.bf16.msra.mxu1 %v1891_v61 }
  0x8c   : > { %1756 = vmatmul.mubr.msk.bf16.vlgmr.msra.gmra.mrb[0].mxu0 %vm1590_vm7, %v1591_v43 }
 0x141   : > { %v527_v62 = vpop.f32.mrb[0].mxu1 }
 0x142   : > { %v1717_v63 = vpop.f32.mrb[1].mxu1 }
 0x143   : > { %v530_v0 = vpop.f32.mrb[2].mxu1 }
 0x144   : > { %v1718_v1 = vpop.f32.mrb[3].mxu1 }
 0x15f   : > { %v722_v2 = vpop.f32.mrb[0].mxu0 }
 0x160   : > { %v1917_v3 = vadd.f32 %v722_v2, %v527_v62  ;;  %v1757_v4 = vpop.f32.mrb[1].mxu0 }
 0x161   : > { %v725_v5 = vpop.f32.mrb[2].mxu0 }
 0x162   : > { %733 = vst [vmem:[%s732_s29] sm:$0xff] %v1917_v3  ;;  %v1918_v6 = vadd.f32 %v725_v5, %v530_v0  ;;  %v1758_v7 = vpop.f32.mrb[3].mxu0  ;;  %v743_v8 = vmul.f32 %v1917_v3, %v1917_v3 }
 0x164   : > { %734 = vst [vmem:[%s732_s29 + $0x8] sm:$0xff] %v1918_v6  ;;  %v736_v9 = vadd.f32 %v1918_v6, %v1917_v3  ;;  %v744_v10 = vmul.f32 %v1918_v6, %v1918_v6 }
 0x166   : > { %v737_v11 = vrot.slane %v736_v9, 4  ;;  %v745_v12 = vadd.f32 %v744_v10, %v743_v8 }
 0x168   : > { %v738_v13 = vadd.f32 %v737_v11, %v736_v9  ;;  %v746_v14 = vrot.slane %v745_v12, 4 }
 0x16a   : > { %v739_v15 = vrot.slane %v738_v13, 2  ;;  %v747_v16 = vadd.f32 %v746_v14, %v745_v12 }
 0x16c   : > { %v740_v17 = vadd.f32 %v739_v15, %v738_v13  ;;  %v748_v18 = vrot.slane %v747_v16, 2 }
 0x16e   : > { %v741_v19 = vrot.slane %v740_v17, 1  ;;  %v749_v20 = vadd.f32 %v748_v18, %v747_v16 }
 0x170   : > { %v750_v21 = vrot.slane %v749_v20, 1  ;;  %v742_v22 = vadd.f32 %v741_v19, %v740_v17 }
 0x172   : > { %v751_v23 = vadd.f32 %v750_v21, %v749_v20 }
 0x174   : > { %v752_v24 = vsel %vm395_vm2, %v742_v22, %v751_v23 }
 0x175   : > { %1792 = vmatmul.mubr.f32.vlgmr.msra.gmra.mrb[4].mxu1 %v752_v24 }
 0x248   : > { %v835_v26 = vpop.f32.mrb[4].mxu1 }
 0x249   : > { %v839_v27 = vadd.f32 %v835_v26, %v735_v25  ;;  %v1793_v28 = vpop.f32.mrb[5].mxu1 }
 0x24b   : > { %841 = vst.msk [vmem:[#allocation3] sm:$0x3] %vm840_vm8, %v839_v27 }
 0x24c PF: > { %p1594_p6 = scmp.ne.s32.totalorder %s2169_s13, 1 }
 0x24d   : > { %v860_v29 = vld [vmem:[%s2646_s3] sm:$0xf] (!%p1594_p6)  ;;  %vm865_vm9 = vcmask (!%p1594_p6), 1043456   ;;  %v2191_v30 = vmov (!%p1594_p6), 0.0   ;;  %vm2192_vm10 = vmmov (!%p1594_p6), 0   ;;  %vm861_vm11 = vcmask (!%p1594_p6), 31744  }
 0x24e   : > { %845 = sbr.rel (%p1594_p6) target bundleno = 1289 (0x509), region = 72  ;;  %1794 = vmatprep.subr.mxu0 (!%p1594_p6), %v2191_v30  ;;  %1796 = vmatprep.mubr.msk.f32.mxu0 (!%p1594_p6), %vm2192_vm10, %v2191_v30  ;;  %v853_v39 = vld [vmem:[%s2648_s5] sm:$0x1] (!%p1594_p6)  ;;  %v2044_v45 = vld [vmem:[%s2645_s2 + $0x8] sm:$0xff] (!%p1594_p6)   ;;  %v2045_v47 = vld [vmem:[%s2645_s2 + $0x10] sm:$0xff] (!%p1594_p6)   ;;  %v2193_v56 = vmov (!%p1594_p6), 0.0|0.0   ;;  %v1016_v63 = vlaneseq (!%p1594_p6) }
 0x24f   : > { %1795 = vmatpush3.msk.msra.mxu0 (!%p1594_p6), %vm865_vm9, %v860_v29  ;;  %1799 = vmatprep.subr.mxu1 (!%p1594_p6), %v2191_v30  ;;  %v2043_v41 = vld [vmem:[%s2645_s2] sm:$0xff] (!%p1594_p6)   ;;  %v2046_v48 = vld [vmem:[%s2645_s2 + $0x18] sm:$0xff] (!%p1594_p6)   ;;  %v2048_v50 = vld [vmem:[%s2645_s2 + $0x28] sm:$0xff] (!%p1594_p6)   ;;  %s1599_s22 = sshll.u32 (!%p1594_p6), %s2165_s12, 4  ;;  %vm1159_vm14 = vcmask (!%p1594_p6), 1040384   ;;  %vm1248_vm15 = vcmask (!%p1594_p6), 25600  }
 0x250   : > { %1800 = vmatpush3.msk.msra.mxu1 (!%p1594_p6), %vm865_vm9, %v860_v29  ;;  %1801 = vmatprep.mubr.msk.f32.mxu1 (!%p1594_p6), %vm2192_vm10, %v2191_v30  ;;  %v857_v43 = vld [vmem:[%s2649_s6] sm:$0x1] (!%p1594_p6)  ;;  %v2049_v51 = vld [vmem:[%s2645_s2 + $0x30] sm:$0xff] (!%p1594_p6)   ;;  %v2050_v52 = vld [vmem:[%s2645_s2 + $0x38] sm:$0xff] (!%p1594_p6)   ;;  %v1017_v0 = vshrl.u32 (!%p1594_p6), %v1016_v63, 7  ;;  %s2528_s27 = scalar_lea.vmem (!%p1594_p6), [#allocation2], %s1599_s22 }
 0x251   : > { %1804 = vmatprep.subr.bf16.mxu0 (!%p1594_p6), %v2191_v30  ;;  %v2047_v49 = vld [vmem:[%s2645_s2 + $0x20] sm:$0xff] (!%p1594_p6)   ;;  %v1162_v54 = vld [vmem:[%s2647_s4 + $0x8] sm:$0xff] (!%p1594_p6)  ;;  %v1163_v55 = vld [vmem:[%s2647_s4 + $0x10] sm:$0xff] (!%p1594_p6)  ;;  %1893 = vmatprep.subr.bf16.mxu1 (!%p1594_p6), %v2193_v56 }
 0x252   : > { %v846_v31 = vld [vmem:[#allocation3] sm:$0x1] (!%p1594_p6)  ;;  %v848_v32 = vld [vmem:[#allocation3 + $0x1] sm:$0x1] (!%p1594_p6)  ;;  %v1164_v58 = vld [vmem:[%s2647_s4 + $0x18] sm:$0xff] (!%p1594_p6)  ;;  %v1018_v1 = vsub.s32 (!%p1594_p6), 0, %v1017_v0 }
 0x253   : > { %v847_v33 = vmul.f32 (!%p1594_p6), 0.001953125, %v846_v31  ;;  %v849_v34 = vmul.f32 (!%p1594_p6), 0.001953125, %v848_v32  ;;  %v1161_v53 = vld [vmem:[%s2647_s4] sm:$0xff] (!%p1594_p6)  ;;  %v1897_v59 = vpack.c.bf16 (!%p1594_p6), %v1164_v58, %v1163_v55  ;;  %v1166_v61 = vld [vmem:[%s2647_s4 + $0x28] sm:$0xff] (!%p1594_p6)  ;;  %v1167_v19 = vld [vmem:[%s2647_s4 + $0x30] sm:$0xff] (!%p1594_p6) }
 0x254   : > { %v1894_v57 = vpack.c.bf16 (!%p1594_p6), %v1162_v54, %v1161_v53  ;;  %v1165_v60 = vld [vmem:[%s2647_s4 + $0x20] sm:$0xff] (!%p1594_p6)  ;;  %v1015_v4 = vld [vmem:[%s2528_s27 + $0x8] sm:$0xff] (!%p1594_p6)  ;;  %v1168_v20 = vld [vmem:[%s2647_s4 + $0x38] sm:$0xff] (!%p1594_p6) }
 0x255   : > { %v850_v35 = vmul.f32 %v847_v33, %v847_v33  ;;  %v1900_v62 = vpack.c.bf16 %v1166_v61, %v1165_v60  ;;  %v1014_v3 = vld [vmem:[%s2528_s27] sm:$0xff]  ;;  %v1903_v21 = vpack.c.bf16 %v1168_v20, %v1167_v19  ;;  %v1170_v23 = vld [vmem:[%s2647_s4 + $0x48] sm:$0xff]  ;;  %v1171_v25 = vld [vmem:[%s2647_s4 + $0x50] sm:$0xff] }
 0x256   : > { %v1169_v22 = vld [vmem:[%s2647_s4 + $0x40] sm:$0xff]  ;;  %v1172_v26 = vld [vmem:[%s2647_s4 + $0x58] sm:$0xff]  ;;  %v1174_v29 = vld [vmem:[%s2647_s4 + $0x68] sm:$0xff] }
 0x257   : > { %v851_v36 = vsub.f32 %v849_v34, %v850_v35  ;;  %v1906_v24 = vpack.c.bf16 %v1170_v23, %v1169_v22  ;;  %v1909_v27 = vpack.c.bf16 %v1172_v26, %v1171_v25  ;;  %v1173_v28 = vld [vmem:[%s2647_s4 + $0x60] sm:$0xff]  ;;  %v1175_v31 = vld [vmem:[%s2647_s4 + $0x70] sm:$0xff]  ;;  %v1176_v32 = vld [vmem:[%s2647_s4 + $0x78] sm:$0xff] }
 0x258   : > { %v1142_v55 = vld [vmem:[#allocation4] sm:$0x3] }
 0x259   : > { %v852_v37 = vmax.f32 %v851_v36, 0.0 }
 0x25b   : > { %v854_v38 = vadd.f32 1e-05, %v852_v37 }
 0x25d   : > { %2051 = vrsqrt.f32 %v854_v38 }
 0x267   : > { %v2052_v40 = vpop.eup %2051 }
 0x268   : > { %v856_v42 = vmul.f32 %v2052_v40, %v853_v39 }
 0x26a   : > { %1797 = vmatmul.mubr.msk.f32.vlgmr.msra.gmra.mrb[0].mxu0 %vm861_vm11, %v856_v42  ;;  %v858_v44 = vmul.f32 %v856_v42, %v847_v33  ;;  %v1915_v33 = vpack.c.bf16 %v1176_v32, %v1175_v31 }
 0x26b   : > { %1805 = vmatpush3.bf16.msra.mxu0 %v2043_v41  ;;  %1820 = vmatprep.mubr.msk.bf16.mxu0 %vm2192_vm10, %v2191_v30 }
 0x26c   : > { %v859_v46 = vsub.f32 %v857_v43, %v858_v44  ;;  %1806 = vmatprep.subr.bf16.mxu0 %v2191_v30 }
 0x26e   : > { %1802 = vmatmul.mubr.msk.f32.vlgmr.msra.gmra.mrb[0].mxu1 %vm861_vm11, %v859_v46 }
 0x26f   : > { %1807 = vmatpush3.bf16.msra.mxu0 %v2044_v45  ;;  %1856 = vmatprep.mubr.msk.f32.mxu1 %vm2192_vm10, %v2191_v30 }
 0x270   : > { %1808 = vmatprep.subr.bf16.mxu0 %v2191_v30  ;;  %1895 = vmatpush3.bf16.msra.mxu1 %v1894_v57 }
 0x271   : > { %1896 = vmatprep.subr.bf16.mxu1 %v2193_v56 }
 0x273   : > { %1809 = vmatpush3.bf16.msra.mxu0 %v2045_v47 }
 0x274   : > { %1810 = vmatprep.subr.bf16.mxu0 %v2191_v30  ;;  %1898 = vmatpush3.bf16.msra.mxu1 %v1897_v59 }
 0x275   : > { %1899 = vmatprep.subr.bf16.mxu1 %v2193_v56 }
 0x277   : > { %1811 = vmatpush3.bf16.msra.mxu0 %v2046_v48 }
 0x278   : > { %1812 = vmatprep.subr.bf16.mxu0 %v2191_v30  ;;  %1901 = vmatpush3.bf16.msra.mxu1 %v1900_v62 }
 0x279   : > { %1902 = vmatprep.subr.bf16.mxu1 %v2193_v56 }
 0x27b   : > { %1813 = vmatpush3.bf16.msra.mxu0 %v2047_v49 }
 0x27c   : > { %1814 = vmatprep.subr.bf16.mxu0 %v2191_v30  ;;  %1904 = vmatpush3.bf16.msra.mxu1 %v1903_v21 }
 0x27d   : > { %1905 = vmatprep.subr.bf16.mxu1 %v2193_v56 }
 0x27f   : > { %1815 = vmatpush3.bf16.msra.mxu0 %v2048_v50 }
 0x280   : > { %1816 = vmatprep.subr.bf16.mxu0 %v2191_v30  ;;  %1907 = vmatpush3.bf16.msra.mxu1 %v1906_v24 }
 0x281   : > { %1908 = vmatprep.subr.bf16.mxu1 %v2193_v56 }
 0x283   : > { %1817 = vmatpush3.bf16.msra.mxu0 %v2049_v51 }
 0x284   : > { %1818 = vmatprep.subr.bf16.mxu0 %v2191_v30  ;;  %1910 = vmatpush3.bf16.msra.mxu1 %v1909_v27  ;;  %v1912_v30 = vpack.c.bf16 %v1174_v29, %v1173_v28 }
 0x285   : > { %1911 = vmatprep.subr.bf16.mxu1 %v2193_v56 }
 0x287   : > { %1819 = vmatpush3.bf16.msra.mxu0 %v2050_v52 }
 0x288   : > { %1913 = vmatpush3.bf16.msra.mxu1 %v1912_v30 }
 0x289   : > { %1914 = vmatprep.subr.bf16.mxu1 %v2193_v56 }
 0x28c   : > { %1916 = vmatpush3.bf16.msra.mxu1 %v1915_v33 }
 0x33d   : > { %v935_v2 = vpop.f32.mrb[0].mxu0 }
 0x33e   : > { %v1019_v5 = vrot.slane %v935_v2, %v1018_v1  ;;  %v1798_v6 = vpop.f32.mrb[1].mxu0 }
 0x340   : > { %v1020_v7 = vmul.f32 %v1019_v5, %v1014_v3  ;;  %v1021_v8 = vmul.f32 %v1019_v5, %v1015_v4 }
 0x341   : > { %v1008_v9 = vpop.f32.mrb[0].mxu1 }
 0x342   : > { %v1025_v10 = vrot.slane %v1008_v9, %v1018_v1  ;;  %v1803_v11 = vpop.f32.mrb[1].mxu1 }
 0x344   : > { %v1026_v12 = vadd.f32 %v1025_v10, %v1020_v7  ;;  %v1027_v13 = vadd.f32 %v1025_v10, %v1021_v8 }
 0x346   : > { %vm1028_vm12 = vcmp.ge.f32.partialorder %v1026_v12, 0.0  ;;  %vm1029_vm13 = vcmp.ge.f32.partialorder %v1027_v13, 0.0  ;;  %v1030_v14 = vmul.f32 0.2, %v1026_v12  ;;  %v1031_v15 = vmul.f32 0.2, %v1027_v13 }
 0x348   : > { %v1032_v16 = vsel %vm1028_vm12, %v1026_v12, %v1030_v14  ;;  %v1033_v17 = vsel %vm1029_vm13, %v1027_v13, %v1031_v15 }
 0x349   : > { %v1034_v18 = vpack.c.bf16 %v1033_v17, %v1032_v16 }
 0x34b   : > { %1821 = vmatmul.mubr.bf16.vlgmr.msra.gmra.mrb[4].mxu0 %v1034_v18 }
 0x41e   : > { %v1133_v34 = vpop.f32.mrb[4].mxu0 }
 0x41f   : > { %1140 = vst [vmem:[%s2528_s27] sm:$0xff] %v1133_v34  ;;  %v1822_v35 = vpop.f32.mrb[5].mxu0  ;;  %v1150_v37 = vmul.f32 %v1133_v34, %v1133_v34 }
 0x420   : > { %v1136_v36 = vpop.f32.mrb[6].mxu0 }
 0x421   : > { %1141 = vst [vmem:[%s2528_s27 + $0x8] sm:$0xff] %v1136_v36  ;;  %v1143_v38 = vadd.f32 %v1136_v36, %v1133_v34  ;;  %v1151_v39 = vmul.f32 %v1136_v36, %v1136_v36  ;;  %v1823_v40 = vpop.f32.mrb[7].mxu0 }
 0x423   : > { %v1144_v41 = vrot.slane %v1143_v38, 4  ;;  %v1152_v42 = vadd.f32 %v1151_v39, %v1150_v37 }
 0x425   : > { %v1145_v43 = vadd.f32 %v1144_v41, %v1143_v38  ;;  %v1153_v44 = vrot.slane %v1152_v42, 4 }
 0x427   : > { %v1146_v45 = vrot.slane %v1145_v43, 2  ;;  %v1154_v46 = vadd.f32 %v1153_v44, %v1152_v42 }
 0x429   : > { %v1147_v47 = vadd.f32 %v1146_v45, %v1145_v43  ;;  %v1155_v48 = vrot.slane %v1154_v46, 2 }
 0x42b   : > { %v1148_v49 = vrot.slane %v1147_v47, 1  ;;  %v1156_v50 = vadd.f32 %v1155_v48, %v1154_v46 }
 0x42d   : > { %v1157_v51 = vrot.slane %v1156_v50, 1  ;;  %v1149_v52 = vadd.f32 %v1148_v49, %v1147_v47 }
 0x42f   : > { %v1158_v53 = vadd.f32 %v1157_v51, %v1156_v50 }
 0x431   : > { %v1160_v54 = vsel %vm1159_vm14, %v1149_v52, %v1158_v53 }
 0x432   : > { %1857 = vmatmul.mubr.f32.vlgmr.msra.gmra.mrb[2].mxu1 %v1160_v54 }
 0x505   : > { %v1243_v56 = vpop.f32.mrb[2].mxu1 }
 0x506   : > { %v1247_v57 = vadd.f32 %v1243_v56, %v1142_v55  ;;  %v1858_v58 = vpop.f32.mrb[3].mxu1 }
 0x508   : > { %1249 = vst.msk [vmem:[#allocation4] sm:$0x3] %vm1248_vm15, %v1247_v57 }
 0x509 PF: > { %p1608_p9 = scmp.ne.s32.totalorder %s2169_s13, 2 }
 0x50a   : > { %v1268_v59 = vld [vmem:[%s2646_s3] sm:$0xf] (!%p1608_p9)  ;;  %vm1273_vm0 = vcmask (!%p1608_p9), 1043456   ;;  %v2194_v60 = vmov (!%p1608_p9), 0.0   ;;  %vm2195_vm1 = vmmov (!%p1608_p9), 0   ;;  %vm1269_vm2 = vcmask (!%p1608_p9), 31744  }
 0x50b   : > { %1253 = sbr.rel (%p1608_p9) target bundleno = 1542 (0x606), region = 76  ;;  %1859 = vmatprep.subr.mxu0 (!%p1608_p9), %v2194_v60  ;;  %1861 = vmatprep.mubr.msk.f32.mxu0 (!%p1608_p9), %vm2195_vm1, %v2194_v60  ;;  %v1261_v5 = vld [vmem:[%s2650_s7] sm:$0x1] (!%p1608_p9)  ;;  %v1426_v11 = vlaneseq (!%p1608_p9)  ;;  %s1613_s18 = sshll.u32 (!%p1608_p9), %s2165_s12, 4  ;;  %v1421_v20 = vld [vmem:[%s2368_s21 + $0x8] sm:$0xff] (!%p1608_p9) }
 0x50c   : > { %1860 = vmatpush3.msk.msra.mxu0 (!%p1608_p9), %vm1273_vm0, %v1268_v59  ;;  %1864 = vmatprep.subr.mxu1 (!%p1608_p9), %v2194_v60  ;;  %v1265_v8 = vld [vmem:[%s2651_s8] sm:$0x1] (!%p1608_p9)  ;;  %s1423_s22 = scalar_lea.vmem (!%p1608_p9), [#allocation2], %s1613_s18 }
 0x50d   : > { %1865 = vmatpush3.msk.msra.mxu1 (!%p1608_p9), %vm1273_vm0, %v1268_v59  ;;  %1866 = vmatprep.mubr.msk.f32.mxu1 (!%p1608_p9), %vm2195_vm1, %v2194_v60  ;;  %v1427_v12 = vshrl.u32 (!%p1608_p9), %v1426_v11, 7  ;;  %v1424_v15 = vld [vmem:[%s1423_s22] sm:$0xff] (!%p1608_p9)  ;;  %v1425_v16 = vld [vmem:[%s1423_s22 + $0x8] sm:$0xff] (!%p1608_p9) }
 0x50e   : > { %v1420_v19 = vld [vmem:[%s2368_s21] sm:$0xff] (!%p1608_p9) }
 0x50f   : > { %v1254_v61 = vld [vmem:[#allocation4] sm:$0x1] (!%p1608_p9)  ;;  %v1256_v62 = vld [vmem:[#allocation4 + $0x1] sm:$0x1] (!%p1608_p9)  ;;  %v1428_v13 = vsub.s32 (!%p1608_p9), 0, %v1427_v12 }
 0x510   : > { %v1255_v63 = vmul.f32 (!%p1608_p9), 0.001953125, %v1254_v61  ;;  %v1257_v0 = vmul.f32 (!%p1608_p9), 0.001953125, %v1256_v62 }
 0x512   : > { %v1258_v1 = vmul.f32 %v1255_v63, %v1255_v63 }
 0x514   : > { %v1259_v2 = vsub.f32 %v1257_v0, %v1258_v1 }
 0x516   : > { %v1260_v3 = vmax.f32 %v1259_v2, 0.0 }
 0x518   : > { %v1262_v4 = vadd.f32 1e-05, %v1260_v3 }
 0x51a   : > { %2053 = vrsqrt.f32 %v1262_v4 }
 0x524   : > { %v2054_v6 = vpop.eup %2053 }
 0x525   : > { %v1264_v7 = vmul.f32 %v2054_v6, %v1261_v5 }
 0x527   : > { %1862 = vmatmul.mubr.msk.f32.vlgmr.msra.gmra.mrb[0].mxu0 %vm1269_vm2, %v1264_v7  ;;  %v1266_v9 = vmul.f32 %v1264_v7, %v1255_v63 }
 0x529   : > { %v1267_v10 = vsub.f32 %v1265_v8, %v1266_v9 }
 0x52b   : > { %1867 = vmatmul.mubr.msk.f32.vlgmr.msra.gmra.mrb[0].mxu1 %vm1269_vm2, %v1267_v10 }
 0x5fa   : > { %v1343_v14 = vpop.f32.mrb[0].mxu0 }
 0x5fb   : > { %v1429_v17 = vrot.slane %v1343_v14, %v1428_v13  ;;  %v1863_v18 = vpop.f32.mrb[1].mxu0 }
 0x5fd   : > { %v1430_v21 = vmul.f32 %v1429_v17, %v1424_v15  ;;  %v1431_v22 = vmul.f32 %v1429_v17, %v1425_v16 }
 0x5fe   : > { %v1416_v23 = vpop.f32.mrb[0].mxu1 }
 0x5ff   : > { %v1432_v24 = vadd.f32 %v1430_v21, %v1420_v19  ;;  %v1433_v25 = vadd.f32 %v1431_v22, %v1421_v20  ;;  %v1437_v26 = vrot.slane %v1416_v23, %v1428_v13  ;;  %v1868_v27 = vpop.f32.mrb[1].mxu1 }
 0x601   : > { %v1438_v28 = vadd.f32 %v1437_v26, %v1432_v24  ;;  %v1439_v29 = vadd.f32 %v1437_v26, %v1433_v25 }
 0x603   : > { %v1440_v30 = vmax.f32 %v1438_v28, 0.0  ;;  %v1441_v31 = vmax.f32 %v1439_v29, 0.0 }
 0x605   : > { %1442 = vst [vmem:[%s2370_s25] sm:$0xff] %v1440_v30  ;;  %1443 = vst [vmem:[%s2370_s25 + $0x8] sm:$0xff] %v1441_v31 }
 0x606 PF: > { %p1452_p10 = scmp.eq.s32.totalorder %s2169_s13, 2  ;;  %s1460_s21 = sshll.u32 %s2370_s25, 4  ;;  %s2582_s21 = int_to_ptr.vmem [resolvable:$true] %s1460_s21 }
 0x607   : > { %s2591_s29 = scalar_lea.sflag [#allocation7], %s364_s14  ;;  %s2083_s17 = scalar_lea.vmem %s2582_s21, 256 }
 0x608   : > { %s2693_s12 = smov (!%p1452_p10, %s2165_s12), 0  ;;  %p2084_p11 = scmp.ne.s32.totalorder %s2582_s21, %s2083_s17 }
 0x609   : > { %s1620_s28 = sshll.u32 %s2693_s12, 8  ;;  %p2674_p0 = scmp.ne.s32.totalorder %s2666_s23, 0 }
 0x60a   : > { %s2587_s24 = scalar_lea.hbm %s2652_s9, %s1620_s28  ;;  %s2196_s13 = smov [#allocation8]  }
 0x60b   : > { %p2085_p1 = pnand %p2084_p11, %p2674_p0  ;;  %s2087_s25 = sshll.u32 %s2196_s13, 4  ;;  %s2088_s25 = int_to_ptr.vmem [resolvable:$false] %s2087_s25 }
 0x60c   : > { %s2089_s19 = scalar_lea.vmem %s2088_s25, 512  ;;  %p2090_p5 = scmp.lt.s32.totalorder %s2582_s21, %s2088_s25 }
 0x60d   : > { %p2086_p3 = pneg %p2085_p1  ;;  %p2091_p7 = scmp.lt.s32.totalorder %s2089_s19, %s2083_s17 }
 0x60f   : > { %p2092_p8 = por %p2091_p7, %p2090_p5 }
 0x611   : > { %p2093_p12 = pnand %p2092_p8, %p2086_p3 }
 0x613   : > { %2096 = shalt.err (!%p2093_p12)
}
 0x614   : > { %s2097_s12 = scalar_lea.hbm %s2587_s24, 256  ;;  %s2101_s18 = scalar_lea.hbm %s2652_s9, 512 }
 0x615   : > { %p2098_p13 = scmp.ne.s32.totalorder %s2587_s24, %s2097_s12  ;;  %p2102_p6 = scmp.lt.u32.totalorder %s2587_s24, %s2652_s9 }
 0x616   : > { %p2103_p9 = scmp.lt.u32.totalorder %s2101_s18, %s2097_s12  ;;  %p2105_p11 = scmp.lt.u32.totalorder %s2097_s12, %s2587_s24 }
 0x617   : > { %p2099_p2 = pnand %p2098_p13, %p2674_p0 }
 0x618   : > { %p2104_p10 = por %p2103_p9, %p2102_p6 }
 0x619   : > { %p2100_p4 = pneg %p2099_p2 }
 0x61a   : > { %p2106_p1 = por %p2105_p11, %p2104_p10 }
 0x61c   : > { %p2107_p3 = pnand %p2106_p1, %p2100_p4 }
 0x61e   : > { %2110 = shalt.err (!%p2107_p3)
}
 0x61f   : > { %s2197_s15 = smov 128   ;;  %s2198_s27 = smov 8  }
 0x620   : > { %1927 = dma.vmem_to_hbm [thread:$0]  (%p2674_p0), %s2582_s21, 256, %s2587_s24, %s2591_s29, %s2197_s15, %s2197_s15, %s2198_s27  }
 0x621 PF: > { %s2675_s17 = sld [smem:[#allocation15_spill]]  ;;  %p1939_p5 = scmp.ge.s32.totalorder %s2181_s16, 2 }
 0x622   : > { %s1475_s13 = sand.u32 1, %s2153_s30  }
 0x623   : > { %s1476_s25 = scalar_lea.sflag [#allocation7], %s1475_s13 }
 0x627   : > { %p2676_p7 = scmp.ne.s32.totalorder %s2675_s17, 0 }
 0x629   : > { %p1934_p8 = pnand %p1939_p5, %p2676_p7 }
 0x62b   : > { %2148 = dma.done.wait (!%p1934_p8), %s1476_s25, 256  }
 0x62c   : > { %2150 = vsyncadd (!%p1934_p8), %s1476_s25, 4294967040  ;;  %s23_s16 = sadd.s32 1, %s2181_s16   ;;  %s2677_s12 = sld [smem:[#allocation11_spill]] }
 0x62d   : > { %p20_p12 = scmp.ge.s32.totalorder %s23_s16, 8   ;;  %s2678_s13 = sld [smem:[#allocation12_spill]] }
 0x62e   : > { %s2679_s14 = sld [smem:[#allocation13_spill]]  ;;  %s2680_s15 = sld [smem:[#allocation14_spill]] }
 0x62f   : > { %s2681_s30 = smov %s2157_s10  ;;  %s2682_s10 = smov %s2161_s11 }
 0x630   : > { %s2683_s11 = smov %s2328_s20  ;;  %22 = sbr.rel (!%p20_p12) target bundleno = 6 (0x6), region = 117 }
 0x637   :  { %1481 = vsyncpa [#allocation6], 1 }
 0x638   :  { %1483 = vsyncpa [#allocation6 + $0x1], 1 }
 0x639   :  { %1484 = vsyncpa [#allocation7], 1 }
 0x63a   :  { %1486 = vsyncpa [#allocation7 + $0x1], 1 }

</bundles_post_ra>
